<compile_context>
chip_gen: v5e
topology: v5e:2x2
jax: 0.10.0
libtpu: 0.0.40
codegen_flags: <defaults>
</compile_context>

<pallas_src>
import jax
import jax.numpy as jnp
import numpy as np
from jax.experimental import pallas as pl
from jax.experimental.pallas import tpu as pltpu

LN = 128  # lane width; every logical vector lives in its own 128-lane block.

# Column-block layout of the packed weight slab W (each block is 128 lanes):
#   0: attn_e   1: comb_e   2: attn_h   3: hh_r   4: hh_z   5: hh_n
#   6: ih_r     7: ih_z     8: ih_n     9: comb_w 10: w_out
# Row layout of the packed bias slab B (8, 128):
#   0: b_attn (-1e30 pad)  1: b_comb  2: b_r  3: b_z  4: b_in  5: b_hn
#   6: b_out (-1e30 pad)   7: zeros


def decoder_decode_kernel(tok_ref,      # SMEM int32[N] (scalar prefetch)
                          emb_ref,      # VMEM (1, 1, 128) gathered embedding row
                          h0_ref,       # (1, 128) initial hidden (padded)
                          w_ref,        # (128, 11*128) packed weight slab
                          enc_ref,      # (128, 128) padded encoder outputs
                          b_ref,        # (8, 128) packed biases
                          out_ref,      # out block: (1, 8, 128)
                          h_sc):        # VMEM scratch (1, 128) carried hidden
    f32 = jnp.float32

    @pl.when(pl.program_id(0) == 0)
    def _():
        h_sc[...] = h0_ref[...]

    e = emb_ref[0]          # (1, 128)
    h = h_sc[...]           # (1, 128)

    # ---- fused dots from e and h (attn_e|comb_e and attn_h|hh_r|hh_z|hh_n) ----
    eh = jnp.dot(e, w_ref[:, 0:2 * LN], preferred_element_type=f32)        # (1, 256)
    hh = jnp.dot(h, w_ref[:, 2 * LN:6 * LN], preferred_element_type=f32)   # (1, 512)

    # ---- attention weights: softmax(Linear(cat[e, h])) over max_length ----
    logits_a = eh[:, 0:LN] + hh[:, 0:LN] + b_ref[0:1, :]    # padded lanes = -1e30
    m_a = jnp.max(logits_a, axis=-1, keepdims=True)
    p_a = jnp.exp(logits_a - m_a)                           # padded lanes -> 0
    weights = p_a / jnp.sum(p_a, axis=-1, keepdims=True)    # (1, 128)

    # ---- weighted encoder outputs ----
    ctx = jnp.dot(weights, enc_ref[...], preferred_element_type=f32)        # (1, 128)

    # ---- combine + ReLU -> GRU input ----
    x = jnp.maximum(
        eh[:, LN:2 * LN]
        + jnp.dot(ctx, w_ref[:, 9 * LN:10 * LN], preferred_element_type=f32)
        + b_ref[1:2, :], 0.0)                                               # (1, 128)

    # ---- GRU single step (PyTorch gate order r, z, n), fused input gates ----
    gx = jnp.dot(x, w_ref[:, 6 * LN:9 * LN], preferred_element_type=f32)    # (1, 384)
    r = jax.nn.sigmoid(gx[:, 0:LN] + hh[:, LN:2 * LN] + b_ref[2:3, :])
    z = jax.nn.sigmoid(gx[:, LN:2 * LN] + hh[:, 2 * LN:3 * LN] + b_ref[3:4, :])
    n = jnp.tanh(gx[:, 2 * LN:3 * LN] + b_ref[4:5, :]
                 + r * (hh[:, 3 * LN:4 * LN] + b_ref[5:6, :]))
    h_new = (1.0 - z) * n + z * h                                           # (1, 128)
    h_sc[...] = h_new

    # ---- output layer + log_softmax ----
    logits_o = (jnp.dot(h_new, w_ref[:, 10 * LN:11 * LN], preferred_element_type=f32)
                + b_ref[6:7, :])                            # padded lanes = -1e30
    m_o = jnp.max(logits_o, axis=-1, keepdims=True)
    sh = logits_o - m_o
    logp = sh - jnp.log(jnp.sum(jnp.exp(sh), axis=-1, keepdims=True))

    # ---- single lane-dense (8,128) block write per step ----
    out_ref[0] = jnp.concatenate(
        [logp, h_new, weights, jnp.zeros((5, LN), f32)], axis=0)


def prepare_decoder_params(emb, w_weights, b_weights, w_combine, b_combine,
                           w_ih, w_hh, b_ih, b_hh, w_out, b_out):
    """One-time weight preparation (model init, NOT per decode step)."""
    f32 = jnp.float32
    vocab, H = emb.shape
    L = w_weights.shape[0]
    O = w_out.shape[0]
    NEG = jnp.float32(-1e30)

    def pad_block(m):
        out = jnp.zeros((LN, LN), f32)
        return out.at[:m.shape[0], :m.shape[1]].set(jnp.asarray(m, f32))

    w_w = jnp.asarray(w_weights, f32)     # (L, 2H)
    w_c = jnp.asarray(w_combine, f32)     # (H, 2H)
    wih = jnp.asarray(w_ih, f32)          # (3H, H)
    whh = jnp.asarray(w_hh, f32)          # (3H, H)
    bih = jnp.asarray(b_ih, f32)
    bhh = jnp.asarray(b_hh, f32)

    blocks = [
        w_w[:, :H].T,          # 0: attn_e (H, L)
        w_c[:, :H].T,          # 1: comb_e (H, H)
        w_w[:, H:].T,          # 2: attn_h (H, L)
        whh[0:H].T,            # 3: hh_r   (H, H)
        whh[H:2 * H].T,        # 4: hh_z
        whh[2 * H:3 * H].T,    # 5: hh_n
        wih[0:H].T,            # 6: ih_r
        wih[H:2 * H].T,        # 7: ih_z
        wih[2 * H:3 * H].T,    # 8: ih_n
        w_c[:, H:].T,          # 9: comb_w (H, H)
        jnp.asarray(w_out, f32).T,  # 10: w_out (H, O)
    ]
    W = jnp.concatenate([pad_block(b) for b in blocks], axis=1)   # (128, 11*128)

    def pad_vec(v, n, fill=0.0):
        return jnp.full((LN,), fill, f32).at[:n].set(jnp.asarray(v, f32))

    B = jnp.stack([
        pad_vec(b_weights, L, NEG),                    # 0: b_attn
        pad_vec(b_combine, H),                         # 1: b_comb
        pad_vec(bih[0:H] + bhh[0:H], H),               # 2: b_r (pre-summed)
        pad_vec(bih[H:2 * H] + bhh[H:2 * H], H),       # 3: b_z (pre-summed)
        pad_vec(bih[2 * H:3 * H], H),                  # 4: b_in
        pad_vec(bhh[2 * H:3 * H], H),                  # 5: b_hn
        pad_vec(b_out, O, NEG),                        # 6: b_out
        jnp.zeros((LN,), f32),                         # 7: unused
    ])                                                 # (8, 128)

    emb_p = jnp.zeros((vocab, 1, LN), f32).at[:, 0, :H].set(jnp.asarray(emb, f32))

    return dict(emb=emb_p, W=W, B=B, H=H, L=L, O=O)


def decoder_gru_weighted_decode(params, tokens, hidden, encoder_outputs):
    """Run N decode steps (tokens supplied up-front) in ONE pallas_call.
    tokens: int[N]; hidden: (1, 1, H); encoder_outputs: (L, H).
    Returns (log_probs (N, O), hiddens (N, H), attention weights (N, L))."""
    H, L, O = params["H"], params["L"], params["O"]
    tokens = jnp.asarray(tokens, jnp.int32).reshape(-1)
    N = tokens.shape[0]

    h0 = jnp.zeros((1, LN), jnp.float32).at[0, :H].set(
        jnp.asarray(hidden, jnp.float32).reshape(H))
    enc = jnp.zeros((LN, LN), jnp.float32).at[:L, :H].set(
        jnp.asarray(encoder_outputs, jnp.float32))

    W, B, emb = params["W"], params["B"], params["emb"]
    Wc = W.shape[1]

    out = pl.pallas_call(
        decoder_decode_kernel,
        out_shape=jax.ShapeDtypeStruct((N, 8, LN), jnp.float32),
        grid_spec=pltpu.PrefetchScalarGridSpec(
            num_scalar_prefetch=1,
            grid=(N,),
            in_specs=[
                # embedding: fetch only the needed row for step s
                pl.BlockSpec((1, 1, LN), lambda s, tok: (tok[s], 0, 0)),
                pl.BlockSpec((1, LN), lambda s, tok: (0, 0)),        # h0
                pl.BlockSpec((LN, Wc), lambda s, tok: (0, 0)),       # weight slab
                pl.BlockSpec((LN, LN), lambda s, tok: (0, 0)),       # encoder outputs
                pl.BlockSpec((8, LN), lambda s, tok: (0, 0)),        # bias slab
            ],
            out_specs=pl.BlockSpec((1, 8, LN), lambda s, tok: (s, 0, 0)),
            scratch_shapes=[pltpu.VMEM((1, LN), jnp.float32)],       # carried hidden
        ),
        compiler_params=pltpu.CompilerParams(dimension_semantics=("arbitrary",)),
    )(tokens, emb, h0, W, enc, B)

    logp = out[:, 0, :O]
    hids = out[:, 1, :H]
    wts = out[:, 2, :L]
    return logp, hids, wts


def decoder_gru_weighted_step(params, tok, hidden, encoder_outputs):
    """Single step matching DecoderGRUWeighted.forward (is_dropout=False).
    Returns (log_probs (1, O), hidden (1, 1, H), weights (1, max_length))."""
    H = params["H"]
    logp, hids, wts = decoder_gru_weighted_decode(
        params, jnp.asarray(tok, jnp.int32).reshape(1), hidden, encoder_outputs)
    return logp, hids.reshape(1, 1, H), wts


def reference_forward(tok, emb, hidden, enc, w_w, b_w, w_c, b_c,
                      w_ih, w_hh, b_ih, b_hh, w_o, b_o):
    """Pure-JAX mirror of DecoderGRUWeighted.forward (is_dropout=False)."""
    H = emb.shape[1]
    e = emb[tok[0]].reshape(1, H)
    h = hidden.reshape(1, H)
    attn = jax.nn.softmax(jnp.concatenate([e, h], axis=1) @ w_w.T + b_w, axis=1)
    ctx = attn @ enc
    x = jnp.maximum(jnp.concatenate([e, ctx], axis=1) @ w_c.T + b_c, 0.0)
    gi = x @ w_ih.T + b_ih
    gh = h @ w_hh.T + b_hh
    r = jax.nn.sigmoid(gi[:, :H] + gh[:, :H])
    z = jax.nn.sigmoid(gi[:, H:2 * H] + gh[:, H:2 * H])
    n = jnp.tanh(gi[:, 2 * H:] + r * gh[:, 2 * H:])
    h_new = (1.0 - z) * n + z * h
    logp = jax.nn.log_softmax(h_new @ w_o.T + b_o, axis=1)
    return logp, h_new.reshape(1, 1, H), attn


if __name__ == "__main__":
    hidden_dim = 32      # H
    output_dim = 16      # vocab / output classes
    max_length = 10      # L (encoder sequence length)

    key = jax.random.PRNGKey(0)
    keys = jax.random.split(key, 12)
    bound = 1.0 / np.sqrt(hidden_dim)

    emb = jax.random.normal(keys[0], (output_dim, hidden_dim), jnp.float32)
    w_weights = jax.random.uniform(keys[1], (max_length, 2 * hidden_dim),
                                   jnp.float32, -bound, bound)
    b_weights = jax.random.uniform(keys[2], (max_length,), jnp.float32, -bound, bound)
    w_combine = jax.random.uniform(keys[3], (hidden_dim, 2 * hidden_dim),
                                   jnp.float32, -bound, bound)
    b_combine = jax.random.uniform(keys[4], (hidden_dim,), jnp.float32, -bound, bound)
    w_ih = jax.random.uniform(keys[5], (3 * hidden_dim, hidden_dim),
                              jnp.float32, -bound, bound)
    w_hh = jax.random.uniform(keys[6], (3 * hidden_dim, hidden_dim),
                              jnp.float32, -bound, bound)
    b_ih = jax.random.uniform(keys[7], (3 * hidden_dim,), jnp.float32, -bound, bound)
    b_hh = jax.random.uniform(keys[8], (3 * hidden_dim,), jnp.float32, -bound, bound)
    w_out = jax.random.uniform(keys[9], (output_dim, hidden_dim),
                               jnp.float32, -bound, bound)
    b_out = jax.random.uniform(keys[10], (output_dim,), jnp.float32, -bound, bound)

    hidden = jnp.zeros((1, 1, hidden_dim), jnp.float32)           # init_hidden()
    encoder_outputs = jax.random.normal(keys[11], (max_length, hidden_dim), jnp.float32)

    # One-time weight prep (hoisted out of the decode-step path).
    params = prepare_decoder_params(emb, w_weights, b_weights, w_combine, b_combine,
                                    w_ih, w_hh, b_ih, b_hh, w_out, b_out)

    # ---- single forward step (module semantics) ----
    tok = jnp.array([3], dtype=jnp.int32)
    out, h_new, weights = decoder_gru_weighted_step(params, tok, hidden, encoder_outputs)
    jax.block_until_ready((out, h_new, weights))

    ref_out, ref_h, ref_w = reference_forward(tok, emb, hidden, encoder_outputs,
                                              w_weights, b_weights, w_combine, b_combine,
                                              w_ih, w_hh, b_ih, b_hh, w_out, b_out)

    assert out.shape == (1, output_dim)
    assert h_new.shape == (1, 1, hidden_dim)
    assert weights.shape == (1, max_length)
    np.testing.assert_allclose(np.asarray(out), np.asarray(ref_out), atol=1e-5, rtol=1e-5)
    np.testing.assert_allclose(np.asarray(h_new), np.asarray(ref_h), atol=1e-5, rtol=1e-5)
    np.testing.assert_allclose(np.asarray(weights), np.asarray(ref_w), atol=1e-5, rtol=1e-5)

    # ---- multi-step decode amortized in a single pallas_call ----
    tokens = jnp.array([3, 7, 1, 12], dtype=jnp.int32)
    logps, hids, wts = decoder_gru_weighted_decode(params, tokens, hidden, encoder_outputs)
    jax.block_until_ready((logps, hids, wts))

    h_ref = hidden
    for s in range(tokens.shape[0]):
        r_lp, h_ref, r_w = reference_forward(tokens[s:s + 1], emb, h_ref, encoder_outputs,
                                             w_weights, b_weights, w_combine, b_combine,
                                             w_ih, w_hh, b_ih, b_hh, w_out, b_out)
        np.testing.assert_allclose(np.asarray(logps[s:s + 1]), np.asarray(r_lp),
                                   atol=1e-5, rtol=1e-5)
        np.testing.assert_allclose(np.asarray(hids[s]).reshape(1, 1, hidden_dim),
                                   np.asarray(h_ref), atol=1e-5, rtol=1e-5)
        np.testing.assert_allclose(np.asarray(wts[s:s + 1]), np.asarray(r_w),
                                   atol=1e-5, rtol=1e-5)

    print("KERNEL_OK")
</pallas_src>

<mosaic_0001>
module attributes {stable_mosaic.version = 11 : i64} {
  func.func @decoder_decode_kernel(%arg0: i32, %arg1: memref<1xi32, #tpu.memory_space<smem>>, %arg2: memref<1x1x128xf32, #tpu.memory_space<vmem>>, %arg3: memref<1x128xf32, #tpu.memory_space<vmem>>, %arg4: memref<128x1408xf32, #tpu.memory_space<vmem>>, %arg5: memref<128x128xf32, #tpu.memory_space<vmem>>, %arg6: memref<8x128xf32, #tpu.memory_space<vmem>>, %arg7: memref<1x8x128xf32, #tpu.memory_space<vmem>>, %arg8: memref<1x128xf32, #tpu.memory_space<vmem>>) attributes {dimension_semantics = [#tpu.dimension_semantics<arbitrary>], iteration_bounds = array<i64: 1>, scalar_prefetch = 1 : i64, scratch_operands = 1 : i64, tpu.core_type = #tpu.core_type<tc>, window_params = [{transform_indices = @transform_0, window_bounds = array<i64: 1, 1, 128>}, {pipeline_mode = #tpu.pipeline_mode<synchronous>, transform_indices = @transform_1, window_bounds = array<i64: 1, 128>}, {pipeline_mode = #tpu.pipeline_mode<synchronous>, transform_indices = @transform_2, window_bounds = array<i64: 128, 1408>}, {pipeline_mode = #tpu.pipeline_mode<synchronous>, transform_indices = @transform_3, window_bounds = array<i64: 128, 128>}, {pipeline_mode = #tpu.pipeline_mode<synchronous>, transform_indices = @transform_4, window_bounds = array<i64: 8, 128>}, {transform_indices = @transform_5, window_bounds = array<i64: 1, 8, 128>}]} {
    %c0_i32 = arith.constant 0 : i32
    %0 = arith.cmpi eq, %arg0, %c0_i32 : i32
    %1 = arith.extui %0 : i1 to i32
    %c0_i32_0 = arith.constant 0 : i32
    %2 = arith.cmpi ne, %1, %c0_i32_0 : i32
    scf.if %2 {
      %c0_40 = arith.constant 0 : index
      %c0_41 = arith.constant 0 : index
      %90 = vector.load %arg3[%c0_40, %c0_41] : memref<1x128xf32, #tpu.memory_space<vmem>>, vector<1x128xf32>
      %c0_42 = arith.constant 0 : index
      %c0_43 = arith.constant 0 : index
      %91 = vector.load %arg8[%c0_42, %c0_43] : memref<1x128xf32, #tpu.memory_space<vmem>>, vector<1x128xf32>
      tpu.vector_store %arg8[%c0_42, %c0_43], %90 {strides = array<i32>} : memref<1x128xf32, #tpu.memory_space<vmem>>, vector<1x128xf32>,
    } else {
    }
    %c0 = arith.constant 0 : index
    %c0_1 = arith.constant 0 : index
    %c0_2 = arith.constant 0 : index
    %3 = vector.load %arg2[%c0, %c0_1, %c0_2] : memref<1x1x128xf32, #tpu.memory_space<vmem>>, vector<1x1x128xf32>
    %4 = vector.shape_cast %3 : vector<1x1x128xf32> to vector<1x128xf32>
    %c0_3 = arith.constant 0 : index
    %c0_4 = arith.constant 0 : index
    %5 = vector.load %arg8[%c0_3, %c0_4] : memref<1x128xf32, #tpu.memory_space<vmem>>, vector<1x128xf32>
    %c0_5 = arith.constant 0 : index
    %c0_6 = arith.constant 0 : index
    %6 = vector.load %arg4[%c0_5, %c0_6] : memref<128x1408xf32, #tpu.memory_space<vmem>>, vector<128x256xf32>
    %cst = arith.constant dense<0.000000e+00> : vector<1x256xf32>
    %7 = tpu.matmul %4, %6, %cst {dimension_numbers = #tpu.dot_dimension_numbers<[1], [0], [0], [1], [0, 0, 1, 1], [], []>} : vector<1x128xf32>, vector<128x256xf32>, vector<1x256xf32> -> vector<1x256xf32>
    %c0_7 = arith.constant 0 : index
    %c256 = arith.constant 256 : index
    %8 = vector.load %arg4[%c0_7, %c256] : memref<128x1408xf32, #tpu.memory_space<vmem>>, vector<128x512xf32>
    %cst_8 = arith.constant dense<0.000000e+00> : vector<1x512xf32>
    %9 = tpu.matmul %5, %8, %cst_8 {dimension_numbers = #tpu.dot_dimension_numbers<[1], [0], [0], [1], [0, 0, 1, 1], [], []>} : vector<1x128xf32>, vector<128x512xf32>, vector<1x512xf32> -> vector<1x512xf32>
    %10 = vector.extract_strided_slice %7 {offsets = [0, 0], sizes = [1, 128], strides = [1, 1]} : vector<1x256xf32> to vector<1x128xf32>
    %11 = vector.extract_strided_slice %9 {offsets = [0, 0], sizes = [1, 128], strides = [1, 1]} : vector<1x512xf32> to vector<1x128xf32>
    %12 = arith.addf %10, %11 : vector<1x128xf32>
    %c0_9 = arith.constant 0 : index
    %c0_10 = arith.constant 0 : index
    %13 = vector.load %arg6[%c0_9, %c0_10] : memref<8x128xf32, #tpu.memory_space<vmem>>, vector<1x128xf32>
    %14 = arith.addf %12, %13 : vector<1x128xf32>
    %cst_11 = arith.constant dense<0xFF800000> : vector<1xf32>
    %15 = vector.multi_reduction <maximumf>, %14, %cst_11 [1] : vector<1x128xf32> to vector<1xf32>
    %16 = vector.shape_cast %15 : vector<1xf32> to vector<1x1xf32>
    %17 = vector.broadcast %16 : vector<1x1xf32> to vector<1x128xf32>
    %18 = arith.subf %14, %17 : vector<1x128xf32>
    %19 = math.exp %18 : vector<1x128xf32>
    %cst_12 = arith.constant dense<0.000000e+00> : vector<1xf32>
    %20 = vector.multi_reduction <add>, %19, %cst_12 [1] : vector<1x128xf32> to vector<1xf32>
    %21 = vector.shape_cast %20 : vector<1xf32> to vector<1x1xf32>
    %22 = vector.broadcast %21 : vector<1x1xf32> to vector<1x128xf32>
    %23 = arith.divf %19, %22 : vector<1x128xf32>
    %c0_13 = arith.constant 0 : index
    %c0_14 = arith.constant 0 : index
    %24 = vector.load %arg5[%c0_13, %c0_14] : memref<128x128xf32, #tpu.memory_space<vmem>>, vector<128x128xf32>
    %cst_15 = arith.constant dense<0.000000e+00> : vector<1x128xf32>
    %25 = tpu.matmul %23, %24, %cst_15 {dimension_numbers = #tpu.dot_dimension_numbers<[1], [0], [0], [1], [0, 0, 1, 1], [], []>} : vector<1x128xf32>, vector<128x128xf32>, vector<1x128xf32> -> vector<1x128xf32>
    %26 = vector.extract_strided_slice %7 {offsets = [0, 128], sizes = [1, 128], strides = [1, 1]} : vector<1x256xf32> to vector<1x128xf32>
    %c0_16 = arith.constant 0 : index
    %c1152 = arith.constant 1152 : index
    %27 = vector.load %arg4[%c0_16, %c1152] : memref<128x1408xf32, #tpu.memory_space<vmem>>, vector<128x128xf32>
    %cst_17 = arith.constant dense<0.000000e+00> : vector<1x128xf32>
    %28 = tpu.matmul %25, %27, %cst_17 {dimension_numbers = #tpu.dot_dimension_numbers<[1], [0], [0], [1], [0, 0, 1, 1], [], []>} : vector<1x128xf32>, vector<128x128xf32>, vector<1x128xf32> -> vector<1x128xf32>
    %29 = arith.addf %26, %28 : vector<1x128xf32>
    %c1 = arith.constant 1 : index
    %c0_18 = arith.constant 0 : index
    %30 = vector.load %arg6[%c1, %c0_18] : memref<8x128xf32, #tpu.memory_space<vmem>>, vector<1x128xf32>
    %31 = arith.addf %29, %30 : vector<1x128xf32>
    %cst_19 = arith.constant 0.000000e+00 : f32
    %32 = vector.broadcast %cst_19 : f32 to vector<1x128xf32>
    %33 = arith.maximumf %31, %32 : vector<1x128xf32>
    %c0_20 = arith.constant 0 : index
    %c768 = arith.constant 768 : index
    %34 = vector.load %arg4[%c0_20, %c768] : memref<128x1408xf32, #tpu.memory_space<vmem>>, vector<128x384xf32>
    %cst_21 = arith.constant dense<0.000000e+00> : vector<1x384xf32>
    %35 = tpu.matmul %33, %34, %cst_21 {dimension_numbers = #tpu.dot_dimension_numbers<[1], [0], [0], [1], [0, 0, 1, 1], [], []>} : vector<1x128xf32>, vector<128x384xf32>, vector<1x384xf32> -> vector<1x384xf32>
    %36 = vector.extract_strided_slice %35 {offsets = [0, 0], sizes = [1, 128], strides = [1, 1]} : vector<1x384xf32> to vector<1x128xf32>
    %37 = vector.extract_strided_slice %9 {offsets = [0, 128], sizes = [1, 128], strides = [1, 1]} : vector<1x512xf32> to vector<1x128xf32>
    %38 = arith.addf %36, %37 : vector<1x128xf32>
    %c2 = arith.constant 2 : index
    %c0_22 = arith.constant 0 : index
    %39 = vector.load %arg6[%c2, %c0_22] : memref<8x128xf32, #tpu.memory_space<vmem>>, vector<1x128xf32>
    %40 = arith.addf %38, %39 : vector<1x128xf32>
    %41 = arith.negf %40 : vector<1x128xf32>
    %42 = math.exp %41 : vector<1x128xf32>
    %cst_23 = arith.constant 1.000000e+00 : f32
    %43 = vector.broadcast %cst_23 : f32 to vector<1x128xf32>
    %44 = arith.addf %43, %42 : vector<1x128xf32>
    %45 = arith.divf %43, %44 : vector<1x128xf32>
    %46 = vector.extract_strided_slice %35 {offsets = [0, 128], sizes = [1, 128], strides = [1, 1]} : vector<1x384xf32> to vector<1x128xf32>
    %47 = vector.extract_strided_slice %9 {offsets = [0, 256], sizes = [1, 128], strides = [1, 1]} : vector<1x512xf32> to vector<1x128xf32>
    %48 = arith.addf %46, %47 : vector<1x128xf32>
    %c3 = arith.constant 3 : index
    %c0_24 = arith.constant 0 : index
    %49 = vector.load %arg6[%c3, %c0_24] : memref<8x128xf32, #tpu.memory_space<vmem>>, vector<1x128xf32>
    %50 = arith.addf %48, %49 : vector<1x128xf32>
    %51 = arith.negf %50 : vector<1x128xf32>
    %52 = math.exp %51 : vector<1x128xf32>
    %cst_25 = arith.constant 1.000000e+00 : f32
    %53 = vector.broadcast %cst_25 : f32 to vector<1x128xf32>
    %54 = arith.addf %53, %52 : vector<1x128xf32>
    %55 = arith.divf %53, %54 : vector<1x128xf32>
    %56 = vector.extract_strided_slice %35 {offsets = [0, 256], sizes = [1, 128], strides = [1, 1]} : vector<1x384xf32> to vector<1x128xf32>
    %c4 = arith.constant 4 : index
    %c0_26 = arith.constant 0 : index
    %57 = vector.load %arg6[%c4, %c0_26] : memref<8x128xf32, #tpu.memory_space<vmem>>, vector<1x128xf32>
    %58 = arith.addf %56, %57 : vector<1x128xf32>
    %59 = vector.extract_strided_slice %9 {offsets = [0, 384], sizes = [1, 128], strides = [1, 1]} : vector<1x512xf32> to vector<1x128xf32>
    %c5 = arith.constant 5 : index
    %c0_27 = arith.constant 0 : index
    %60 = vector.load %arg6[%c5, %c0_27] : memref<8x128xf32, #tpu.memory_space<vmem>>, vector<1x128xf32>
    %61 = arith.addf %59, %60 : vector<1x128xf32>
    %62 = arith.mulf %45, %61 : vector<1x128xf32>
    %63 = arith.addf %58, %62 : vector<1x128xf32>
    %64 = math.tanh %63 : vector<1x128xf32>
    %cst_28 = arith.constant 1.000000e+00 : f32
    %65 = vector.broadcast %cst_28 : f32 to vector<1x128xf32>
    %66 = arith.subf %65, %55 : vector<1x128xf32>
    %67 = arith.mulf %66, %64 : vector<1x128xf32>
    %68 = arith.mulf %55, %5 : vector<1x128xf32>
    %69 = arith.addf %67, %68 : vector<1x128xf32>
    %c0_29 = arith.constant 0 : index
    %c0_30 = arith.constant 0 : index
    %70 = vector.load %arg8[%c0_29, %c0_30] : memref<1x128xf32, #tpu.memory_space<vmem>>, vector<1x128xf32>
    tpu.vector_store %arg8[%c0_29, %c0_30], %69 {strides = array<i32>} : memref<1x128xf32, #tpu.memory_space<vmem>>, vector<1x128xf32>,
    %c0_31 = arith.constant 0 : index
    %c1280 = arith.constant 1280 : index
    %71 = vector.load %arg4[%c0_31, %c1280] : memref<128x1408xf32, #tpu.memory_space<vmem>>, vector<128x128xf32>
    %cst_32 = arith.constant dense<0.000000e+00> : vector<1x128xf32>
    %72 = tpu.matmul %69, %71, %cst_32 {dimension_numbers = #tpu.dot_dimension_numbers<[1], [0], [0], [1], [0, 0, 1, 1], [], []>} : vector<1x128xf32>, vector<128x128xf32>, vector<1x128xf32> -> vector<1x128xf32>
    %c6 = arith.constant 6 : index
    %c0_33 = arith.constant 0 : index
    %73 = vector.load %arg6[%c6, %c0_33] : memref<8x128xf32, #tpu.memory_space<vmem>>, vector<1x128xf32>
    %74 = arith.addf %72, %73 : vector<1x128xf32>
    %cst_34 = arith.constant dense<0xFF800000> : vector<1xf32>
    %75 = vector.multi_reduction <maximumf>, %74, %cst_34 [1] : vector<1x128xf32> to vector<1xf32>
    %76 = vector.shape_cast %75 : vector<1xf32> to vector<1x1xf32>
    %77 = vector.broadcast %76 : vector<1x1xf32> to vector<1x128xf32>
    %78 = arith.subf %74, %77 : vector<1x128xf32>
    %79 = math.exp %78 : vector<1x128xf32>
    %cst_35 = arith.constant dense<0.000000e+00> : vector<1xf32>
    %80 = vector.multi_reduction <add>, %79, %cst_35 [1] : vector<1x128xf32> to vector<1xf32>
    %81 = vector.shape_cast %80 : vector<1xf32> to vector<1x1xf32>
    %82 = math.log %81 : vector<1x1xf32>
    %83 = vector.broadcast %82 : vector<1x1xf32> to vector<1x128xf32>
    %84 = arith.subf %78, %83 : vector<1x128xf32>
    %cst_36 = arith.constant 0.000000e+00 : f32
    %85 = vector.broadcast %cst_36 : f32 to vector<5x128xf32>
    %86 = tpu.concatenate %84, %69, %23, %85 in 0 : vector<1x128xf32>, vector<1x128xf32>, vector<1x128xf32>, vector<5x128xf32> -> vector<8x128xf32>
    %c0_37 = arith.constant 0 : index
    %c0_38 = arith.constant 0 : index
    %c0_39 = arith.constant 0 : index
    %87 = vector.load %arg7[%c0_37, %c0_38, %c0_39] : memref<1x8x128xf32, #tpu.memory_space<vmem>>, vector<1x8x128xf32>
    %88 = vector.shape_cast %87 : vector<1x8x128xf32> to vector<8x128xf32>
    %89 = vector.shape_cast %86 : vector<8x128xf32> to vector<1x8x128xf32>
    tpu.vector_store %arg7[%c0_37, %c0_38, %c0_39], %89 {strides = array<i32>} : memref<1x8x128xf32, #tpu.memory_space<vmem>>, vector<1x8x128xf32>,
    return
  }
  func.func @transform_0(%arg0: i32, %arg1: memref<1xi32, #tpu.memory_space<smem>>) -> (i32, i32, i32) {
    %0 = arith.index_cast %arg0 : i32 to index
    %1 = memref.load %arg1[%0] : memref<1xi32, #tpu.memory_space<smem>>
    %c0_i32 = arith.constant 0 : i32
    %c0_i32_0 = arith.constant 0 : i32
    %c0_i32_1 = arith.constant 0 : i32
    return %1, %c0_i32, %c0_i32_0 : i32, i32, i32
  }
  func.func @transform_1(%arg0: i32, %arg1: memref<1xi32, #tpu.memory_space<smem>>) -> (i32, i32) {
    %c0_i32 = arith.constant 0 : i32
    %c0_i32_0 = arith.constant 0 : i32
    %c0_i32_1 = arith.constant 0 : i32
    return %c0_i32, %c0_i32_0 : i32, i32
  }
  func.func @transform_2(%arg0: i32, %arg1: memref<1xi32, #tpu.memory_space<smem>>) -> (i32, i32) {
    %c0_i32 = arith.constant 0 : i32
    %c0_i32_0 = arith.constant 0 : i32
    %c0_i32_1 = arith.constant 0 : i32
    return %c0_i32, %c0_i32_0 : i32, i32
  }
  func.func @transform_3(%arg0: i32, %arg1: memref<1xi32, #tpu.memory_space<smem>>) -> (i32, i32) {
    %c0_i32 = arith.constant 0 : i32
    %c0_i32_0 = arith.constant 0 : i32
    %c0_i32_1 = arith.constant 0 : i32
    return %c0_i32, %c0_i32_0 : i32, i32
  }
  func.func @transform_4(%arg0: i32, %arg1: memref<1xi32, #tpu.memory_space<smem>>) -> (i32, i32) {
    %c0_i32 = arith.constant 0 : i32
    %c0_i32_0 = arith.constant 0 : i32
    %c0_i32_1 = arith.constant 0 : i32
    return %c0_i32, %c0_i32_0 : i32, i32
  }
  func.func @transform_5(%arg0: i32, %arg1: memref<1xi32, #tpu.memory_space<smem>>) -> (i32, i32, i32) {
    %c0_i32 = arith.constant 0 : i32
    %c0_i32_0 = arith.constant 0 : i32
    %c0_i32_1 = arith.constant 0 : i32
    return %arg0, %c0_i32, %c0_i32_0 : i32, i32, i32
  }
}

</mosaic_0001>

<bundles_post_ra>
// kernel: tpu_custom_call.1
= control target key start
LH: loop header
LB: loop body
LE: loop exit
PB: predicated region body
PF: predicated region fallthrough
CT: control target
= control target key end

     0   :  { %12 = vsyncpa [#allocation6], 0  ;;  %s913_s0 = inlined_call_operand.<no memory space> [shape: s32[1], index: 0, kind: input, shape index: {}]   ;;  %s914_s1 = inlined_call_operand.hbm [shape: f32[16,1,128], index: 1, kind: input, shape index: {}]   ;;  %s915_s2 = inlined_call_operand.vmem [shape: f32[1,128], index: 2, kind: input, shape index: {}]   ;;  %s916_s3 = inlined_call_operand.hbm [shape: f32[128,1408], index: 3, kind: input, shape index: {}]   ;;  %s917_s4 = inlined_call_operand.hbm [shape: f32[128,128], index: 4, kind: input, shape index: {}]   ;;  %s918_s5 = inlined_call_operand.hbm [shape: f32[8,128], index: 5, kind: input, shape index: {}]   ;;  %s919_s6 = inlined_call_operand.hbm [shape: f32[1,8,128], index: 6, kind: output, shape index: {}]  }
   0x1   :  { %13 = vsyncpa [#allocation9], 0 }
   0x2   :  { %14 = vsyncpa [#allocation12], 0  ;;  %s35_s23 = sshll.u32 %s916_s3, 4  ;;  %s36_s23 = int_to_ptr.hbm [resolvable:$true] %s35_s23 }
   0x3   :  { %15 = vsyncpa [#allocation7], 0  ;;  %s815_s24 = smov [#allocation8]   ;;  %s21_s30 = scalar_lea.hbm %s914_s1, %s913_s0 }
   0x4   :  { %s37_s25 = sshll.u32 %s815_s24, 4  ;;  %s816_s7 = smov 1408   ;;  %s38_s25 = int_to_ptr.vmem [resolvable:$true] %s37_s25 }
   0x5   :  { %s817_s8 = smov 88   ;;  %s23_s9 = sshll.u32 %s21_s30, 4  ;;  %s24_s9 = int_to_ptr.hbm [resolvable:$true] %s23_s9 }
   0x6   :  { %43 = dma.hbm_to_vmem [thread:$0]  %s36_s23, 22528, %s38_s25, [#allocation9], %s816_s7, %s816_s7, %s817_s8  }
   0x7   :  { %s818_s10 = smov [#allocation5]   ;;  %s48_s13 = sshll.u32 %s917_s4, 4  ;;  %s49_s13 = int_to_ptr.hbm [resolvable:$true] %s48_s13 }
   0x8   :  { %s25_s11 = sshll.u32 %s818_s10, 4  ;;  %s711_s14 = sshra.s32 %s24_s9, 4  ;;  %s26_s11 = int_to_ptr.vmem [resolvable:$true] %s25_s11  ;;  %s712_s14 = int_to_ptr.hbm [resolvable:$true] %s711_s14 }
   0x9   :  { %s713_s15 = scalar_lea.hbm %s712_s14, 1  ;;  %s715_s0 = scalar_lea.hbm %s914_s1, 16 }
   0xa   :  { %p714_p0 = scmp.ne.s32.totalorder %s712_s14, %s713_s15  ;;  %p716_p1 = scmp.lt.s32.totalorder %s712_s14, %s914_s1 }
   0xb   :  { %p717_p2 = scmp.lt.s32.totalorder %s715_s0, %s713_s15 }
   0xd   :  { %p718_p3 = por %p717_p2, %p716_p1 }
   0xf   :  { %p719_p4 = pnand %p718_p3, %p714_p0 }
  0x11   :  { %722 = shalt.err (!%p719_p4)
}
  0x12   :  { %28 = dma.hbm_to_vmem [thread:$0]  %s24_s9, 16, %s26_s11, [#allocation6]  }
  0x13   :  { %s819_s20 = smov [#allocation10]   ;;  %s820_s21 = smov 128  }
  0x14   :  { %s50_s4 = sshll.u32 %s819_s20, 4  ;;  %s821_s22 = smov 8   ;;  %s51_s4 = int_to_ptr.vmem [resolvable:$true] %s50_s4 }
  0x15   :  { %56 = dma.hbm_to_vmem [thread:$0]  %s49_s13, 2048, %s51_s4, [#allocation9], %s820_s21, %s820_s21, %s821_s22  }
  0x16   :  { %s62_s25 = sshll.u32 %s918_s5, 4  ;;  %s822_s26 = smov [#allocation11]   ;;  %s63_s25 = int_to_ptr.hbm [resolvable:$true] %s62_s25 }
  0x17   :  { %s64_s27 = sshll.u32 %s822_s26, 4  ;;  %s65_s27 = int_to_ptr.vmem [resolvable:$true] %s64_s27 }
  0x18   :  { %67 = dma.hbm_to_vmem [thread:$0]  %s63_s25, 128, %s65_s27, [#allocation12]  }
  0x19   :  { %807 = dma.done.wait [#allocation6], 16  }
  0x1a   :  { %808 = vsyncadd [#allocation6], 4294967280 }
  0x1b   :  { %809 = dma.done.wait [#allocation9], 24576  }
  0x1c   :  { %810 = vsyncadd [#allocation9], 4294942720 }
  0x1d   :  { %811 = dma.done.wait [#allocation12], 128  }
  0x1e   :  { %812 = vsyncadd [#allocation12], 4294967168  ;;  %v225_v0 = vld [vmem:[#allocation8 + $0x538] sm:$0xff]  ;;  %v221_v1 = vld [vmem:[#allocation8 + $0x4e0] sm:$0xff]  ;;  %vm312_vm0 = vcmask 1040384   ;;  %vm633_vm13 = vcmask 1041408  }
  0x1f   :  { %229 = vmatpush.msra.mxu2 %v225_v0  ;;  %v123_v2 = vld [vmem:[#allocation8 + $0x528] sm:$0xff]  ;;  %v121_v3 = vld [vmem:[#allocation8 + $0x4d0] sm:$0xff]  ;;  %v119_v5 = vld [vmem:[#allocation8 + $0x478] sm:$0xff]  ;;  %s645_s7 = sshll.u32 %s919_s6, 4  ;;  %vm635_vm14 = vcmask 1042432   ;;  %s646_s7 = int_to_ptr.hbm [resolvable:$true] %s645_s7 }
  0x20   :  { %v217_v4 = vld [vmem:[#allocation8 + $0x488] sm:$0xff]  ;;  %125 = vmatpush.msra.mxu0 %v123_v2  ;;  %v213_v6 = vld [vmem:[#allocation8 + $0x430] sm:$0xff]  ;;  %v117_v7 = vld [vmem:[#allocation8 + $0x420] sm:$0xff] }
  0x21   :  { %230 = vmatpush.msra.mxu2 %v221_v1  ;;  %v209_v8 = vld [vmem:[#allocation8 + $0x3d8] sm:$0xff]  ;;  %v115_v9 = vld [vmem:[#allocation8 + $0x3c8] sm:$0xff]  ;;  %v205_v10 = vld [vmem:[#allocation8 + $0x380] sm:$0xff] }
  0x22   :  { %126 = vmatpush.msra.mxu0 %v121_v3  ;;  %v113_v11 = vld [vmem:[#allocation8 + $0x370] sm:$0xff]  ;;  %v89_v12 = vld [vmem:[%s915_s2] sm:$0x1]  ;;  %v201_v13 = vld [vmem:[#allocation8 + $0x328] sm:$0xff]  ;;  %s823_s2 = smov [#allocation13]  }
  0x23   :  { %231 = vmatpush.msra.mxu2 %v217_v4  ;;  %90 = vst [vmem:[#allocation2] sm:$0x1] %v89_v12  ;;  %v111_v14 = vld [vmem:[#allocation8 + $0x318] sm:$0xff]  ;;  %v197_v15 = vld [vmem:[#allocation8 + $0x2d0] sm:$0xff]  ;;  %v109_v16 = vld [vmem:[#allocation8 + $0x2c0] sm:$0xff]  ;;  %s643_s28 = sshll.u32 %s823_s2, 4  ;;  %s644_s28 = int_to_ptr.vmem [resolvable:$true] %s643_s28 }
  0x24   :  { %127 = vmatpush.msra.mxu0 %v119_v5  ;;  %v193_v17 = vld [vmem:[#allocation8 + $0x278] sm:$0xff]  ;;  %v107_v18 = vld [vmem:[#allocation8 + $0x268] sm:$0xff]  ;;  %v189_v19 = vld [vmem:[#allocation8 + $0x220] sm:$0xff] }
  0x25   :  { %232 = vmatpush.msra.mxu2 %v213_v6  ;;  %v105_v20 = vld [vmem:[#allocation8 + $0x210] sm:$0xff]  ;;  %v185_v21 = vld [vmem:[#allocation8 + $0x1c8] sm:$0xff]  ;;  %v103_v22 = vld [vmem:[#allocation8 + $0x1b8] sm:$0xff] }
  0x26   :  { %128 = vmatpush.msra.mxu0 %v117_v7  ;;  %v181_v23 = vld [vmem:[#allocation8 + $0x170] sm:$0xff]  ;;  %v101_v24 = vld [vmem:[#allocation8 + $0x160] sm:$0xff]  ;;  %v177_v25 = vld [vmem:[#allocation8 + $0x118] sm:$0xff] }
  0x27   :  { %233 = vmatpush.msra.mxu2 %v209_v8  ;;  %v99_v26 = vld [vmem:[#allocation8 + $0x108] sm:$0xff]  ;;  %v173_v27 = vld [vmem:[#allocation8 + $0xc0] sm:$0xff]  ;;  %v97_v28 = vld [vmem:[#allocation8 + $0xb0] sm:$0xff] }
  0x28   :  { %129 = vmatpush.msra.mxu0 %v115_v9  ;;  %v169_v29 = vld [vmem:[#allocation8 + $0x68] sm:$0xff]  ;;  %v95_v30 = vld [vmem:[#allocation8 + $0x58] sm:$0xff]  ;;  %v165_v31 = vld [vmem:[#allocation8 + $0x10] sm:$0xff] }
  0x29   :  { %234 = vmatpush.msra.mxu2 %v205_v10  ;;  %v93_v33 = vld [vmem:[#allocation8] sm:$0xff]  ;;  %v885_v34 = vld [vmem:[#allocation5] sm:$0x1]  ;;  %v351_v42 = vld [vmem:[#allocation10 + $0x70] sm:$0xff] }
  0x2a   :  { %130 = vmatpush.msra.mxu0 %v113_v11  ;;  %v883_v32 = vld [vmem:[#allocation2] sm:$0x1]  ;;  %v310_v37 = vld [vmem:[#allocation11] sm:$0x1]  ;;  %v350_v43 = vld [vmem:[#allocation10 + $0x68] sm:$0xff] }
  0x2b   :  { %235 = vmatpush.msra.mxu2 %v201_v13  ;;  %v352_v41 = vld [vmem:[#allocation10 + $0x78] sm:$0xff]  ;;  %v349_v44 = vld [vmem:[#allocation10 + $0x60] sm:$0xff]  ;;  %v347_v46 = vld [vmem:[#allocation10 + $0x50] sm:$0xff] }
  0x2c   :  { %131 = vmatpush.msra.mxu0 %v111_v14  ;;  %v348_v45 = vld [vmem:[#allocation10 + $0x58] sm:$0xff]  ;;  %v346_v52 = vld [vmem:[#allocation10 + $0x48] sm:$0xff]  ;;  %v345_v53 = vld [vmem:[#allocation10 + $0x40] sm:$0xff] }
  0x2d   :  { %236 = vmatpush.msra.mxu2 %v197_v15  ;;  %v344_v54 = vld [vmem:[#allocation10 + $0x38] sm:$0xff]  ;;  %v343_v55 = vld [vmem:[#allocation10 + $0x30] sm:$0xff]  ;;  %v342_v56 = vld [vmem:[#allocation10 + $0x28] sm:$0xff] }
  0x2e   :  { %132 = vmatpush.msra.mxu0 %v109_v16  ;;  %v341_v57 = vld [vmem:[#allocation10 + $0x20] sm:$0xff]  ;;  %v340_v58 = vld [vmem:[#allocation10 + $0x18] sm:$0xff]  ;;  %v339_v59 = vld [vmem:[#allocation10 + $0x10] sm:$0xff] }
  0x2f   :  { %237 = vmatpush.msra.mxu2 %v193_v17  ;;  %v338_v60 = vld [vmem:[#allocation10 + $0x8] sm:$0xff]  ;;  %v337_v61 = vld [vmem:[#allocation10] sm:$0xff]  ;;  %v218_v0 = vld [vmem:[#allocation8 + $0x490] sm:$0xff] }
  0x30   :  { %133 = vmatpush.msra.mxu0 %v107_v18  ;;  %v226_v62 = vld [vmem:[#allocation8 + $0x540] sm:$0xff]  ;;  %v222_v63 = vld [vmem:[#allocation8 + $0x4e8] sm:$0xff]  ;;  %v214_v1 = vld [vmem:[#allocation8 + $0x438] sm:$0xff] }
  0x31   :  { %238 = vmatpush.msra.mxu2 %v189_v19  ;;  %249 = vmatpush.msra.mxu3 %v226_v62  ;;  %v210_v2 = vld [vmem:[#allocation8 + $0x3e0] sm:$0xff]  ;;  %v124_v3 = vld [vmem:[#allocation8 + $0x530] sm:$0xff]  ;;  %v122_v4 = vld [vmem:[#allocation8 + $0x4d8] sm:$0xff] }
  0x32   :  { %134 = vmatpush.msra.mxu0 %v105_v20  ;;  %145 = vmatpush.msra.mxu1 %v124_v3  ;;  %v206_v5 = vld [vmem:[#allocation8 + $0x388] sm:$0xff]  ;;  %v120_v6 = vld [vmem:[#allocation8 + $0x480] sm:$0xff]  ;;  %v202_v7 = vld [vmem:[#allocation8 + $0x330] sm:$0xff] }
  0x33   :  { %239 = vmatpush.msra.mxu2 %v185_v21  ;;  %250 = vmatpush.msra.mxu3 %v222_v63  ;;  %v118_v8 = vld [vmem:[#allocation8 + $0x428] sm:$0xff]  ;;  %v198_v10 = vld [vmem:[#allocation8 + $0x2d8] sm:$0xff]  ;;  %v116_v11 = vld [vmem:[#allocation8 + $0x3d0] sm:$0xff] }
  0x34   :  { %135 = vmatpush.msra.mxu0 %v103_v22  ;;  %146 = vmatpush.msra.mxu1 %v122_v4  ;;  %v194_v12 = vld [vmem:[#allocation8 + $0x280] sm:$0xff]  ;;  %v114_v13 = vld [vmem:[#allocation8 + $0x378] sm:$0xff]  ;;  %v190_v14 = vld [vmem:[#allocation8 + $0x228] sm:$0xff] }
  0x35   :  { %240 = vmatpush.msra.mxu2 %v181_v23  ;;  %251 = vmatpush.msra.mxu3 %v218_v0  ;;  %v112_v15 = vld [vmem:[#allocation8 + $0x320] sm:$0xff]  ;;  %v186_v16 = vld [vmem:[#allocation8 + $0x1d0] sm:$0xff]  ;;  %v110_v17 = vld [vmem:[#allocation8 + $0x2c8] sm:$0xff] }
  0x36   :  { %136 = vmatpush.msra.mxu0 %v101_v24  ;;  %147 = vmatpush.msra.mxu1 %v120_v6  ;;  %v182_v20 = vld [vmem:[#allocation8 + $0x178] sm:$0xff]  ;;  %v108_v21 = vld [vmem:[#allocation8 + $0x270] sm:$0xff]  ;;  %v178_v23 = vld [vmem:[#allocation8 + $0x120] sm:$0xff] }
  0x37   :  { %241 = vmatpush.msra.mxu2 %v177_v25  ;;  %252 = vmatpush.msra.mxu3 %v214_v1  ;;  %v106_v24 = vld [vmem:[#allocation8 + $0x218] sm:$0xff]  ;;  %v228_v63 = vld [vmem:[#allocation8 + $0x550] sm:$0xff]  ;;  %v215_v0 = vld [vmem:[#allocation8 + $0x440] sm:$0xff] }
  0x38   :  { %137 = vmatpush.msra.mxu0 %v99_v26  ;;  %148 = vmatpush.msra.mxu1 %v118_v8  ;;  %v219_v62 = vld [vmem:[#allocation8 + $0x498] sm:$0xff]  ;;  %v220_v3 = vld [vmem:[#allocation8 + $0x4a0] sm:$0xff]  ;;  %v207_v4 = vld [vmem:[#allocation8 + $0x390] sm:$0xff] }
  0x39   :  { %242 = vmatpush.msra.mxu2 %v173_v27  ;;  %253 = vmatpush.msra.mxu3 %v210_v2  ;;  %v224_v1 = vld [vmem:[#allocation8 + $0x4f8] sm:$0xff]  ;;  %v211_v2 = vld [vmem:[#allocation8 + $0x3e8] sm:$0xff] }
  0x3a   :  { %138 = vmatpush.msra.mxu0 %v97_v28  ;;  %149 = vmatpush.msra.mxu1 %v116_v11  ;;  %v174_v28 = vld [vmem:[#allocation8 + $0xc8] sm:$0xff]  ;;  %v203_v6 = vld [vmem:[#allocation8 + $0x338] sm:$0xff] }
  0x3b   :  { %243 = vmatpush.msra.mxu2 %v169_v29  ;;  %254 = vmatpush.msra.mxu3 %v206_v5  ;;  %v104_v29 = vld [vmem:[#allocation8 + $0x1c0] sm:$0xff]  ;;  %v216_v5 = vld [vmem:[#allocation8 + $0x448] sm:$0xff]  ;;  %v454_v11 = vld [vmem:[#allocation8 + $0x4b8] sm:$0xff] }
  0x3c   :  { %139 = vmatpush.msra.mxu0 %v95_v30  ;;  %150 = vmatpush.msra.mxu1 %v114_v13  ;;  %v460_v8 = vld [vmem:[#allocation8 + $0x568] sm:$0xff]  ;;  %v204_v13 = vld [vmem:[#allocation8 + $0x340] sm:$0xff] }
  0x3d   :  { %244 = vmatpush.msra.mxu2 %v165_v31  ;;  %255 = vmatpush.msra.mxu3 %v202_v7  ;;  %v170_v31 = vld [vmem:[#allocation8 + $0x70] sm:$0xff] }
  0x3e   :  { %245 = vmatmul.f32.vlgmr.msra.gmra.mxu2 %v883_v32  ;;  %140 = vmatpush.msra.mxu0 %v93_v33  ;;  %v102_v33 = vld [vmem:[#allocation8 + $0x168] sm:$0xff]  ;;  %v212_v7 = vld [vmem:[#allocation8 + $0x3f0] sm:$0xff] }
  0x3f   :  { %141 = vmatmul.f32.vlgmr.msra.gmra.mxu0 %v885_v34  ;;  %353 = vmatpush.msrb.mxu2 %v352_v41 }
  0x40   :  { %256 = vmatpush.msra.mxu3 %v198_v10  ;;  %151 = vmatpush.msra.mxu1 %v112_v15  ;;  %v457_v10 = vld [vmem:[#allocation8 + $0x510] sm:$0xff] }
  0x41   :  { %354 = vmatpush.msrb.mxu2 %v351_v42  ;;  %v387_v42 = vld [vmem:[#allocation8 + $0x518] sm:$0xff]  ;;  %v191_v15 = vld [vmem:[#allocation8 + $0x230] sm:$0xff] }
  0x42   :  { %257 = vmatpush.msra.mxu3 %v194_v12  ;;  %152 = vmatpush.msra.mxu1 %v110_v17  ;;  %v195_v12 = vld [vmem:[#allocation8 + $0x288] sm:$0xff] }
  0x43   :  { %355 = vmatpush.msrb.mxu2 %v350_v43  ;;  %v386_v43 = vld [vmem:[#allocation8 + $0x4c0] sm:$0xff]  ;;  %v448_v17 = vld [vmem:[#allocation8 + $0x408] sm:$0xff] }
  0x44   :  { %258 = vmatpush.msra.mxu3 %v190_v14  ;;  %153 = vmatpush.msra.mxu1 %v108_v21  ;;  %v451_v14 = vld [vmem:[#allocation8 + $0x460] sm:$0xff] }
  0x45   :  { %356 = vmatpush.msrb.mxu2 %v349_v44  ;;  %v385_v44 = vld [vmem:[#allocation8 + $0x468] sm:$0xff]  ;;  %v183_v21 = vld [vmem:[#allocation8 + $0x180] sm:$0xff] }
  0x46   :  { %259 = vmatpush.msra.mxu3 %v186_v16  ;;  %154 = vmatpush.msra.mxu1 %v106_v24  ;;  %v200_v16 = vld [vmem:[#allocation8 + $0x2e8] sm:$0xff] }
  0x47   :  { %357 = vmatpush.msrb.mxu2 %v348_v45  ;;  %v384_v45 = vld [vmem:[#allocation8 + $0x410] sm:$0xff]  ;;  %v179_v24 = vld [vmem:[#allocation8 + $0x128] sm:$0xff] }
  0x48   :  { %260 = vmatpush.msra.mxu3 %v182_v20  ;;  %155 = vmatpush.msra.mxu1 %v104_v29  ;;  %v445_v20 = vld [vmem:[#allocation8 + $0x3b0] sm:$0xff]  ;;  %v436_v29 = vld [vmem:[#allocation8 + $0x2a8] sm:$0xff] }
  0x49   :  { %358 = vmatpush.msrb.mxu2 %v347_v46  ;;  %v383_v46 = vld [vmem:[#allocation8 + $0x3b8] sm:$0xff] }
  0x4a   :  { %261 = vmatpush.msra.mxu3 %v178_v23  ;;  %156 = vmatpush.msra.mxu1 %v102_v33  ;;  %v442_v23 = vld [vmem:[#allocation8 + $0x358] sm:$0xff]  ;;  %v433_v33 = vld [vmem:[#allocation8 + $0x250] sm:$0xff] }
  0x4b   :  { %359 = vmatpush.msrb.mxu2 %v346_v52  ;;  %v377_v52 = vld [vmem:[#allocation8 + $0x1a8] sm:$0xff] }
  0x4c   :  { %262 = vmatpush.msra.mxu3 %v174_v28  ;;  %v184_v28 = vld [vmem:[#allocation8 + $0x188] sm:$0xff] }
  0x4d   :  { %360 = vmatpush.msrb.mxu2 %v345_v53  ;;  %v376_v53 = vld [vmem:[#allocation8 + $0x150] sm:$0xff] }
  0x4e   :  { %263 = vmatpush.msra.mxu3 %v170_v31  ;;  %v180_v31 = vld [vmem:[#allocation8 + $0x130] sm:$0xff] }
  0x4f   :  { %361 = vmatpush.msrb.mxu2 %v344_v54  ;;  %v375_v54 = vld [vmem:[#allocation8 + $0xf8] sm:$0xff] }
  0x51   :  { %362 = vmatpush.msrb.mxu2 %v343_v55  ;;  %v374_v55 = vld [vmem:[#allocation8 + $0xa0] sm:$0xff] }
  0x53   :  { %363 = vmatpush.msrb.mxu2 %v342_v56  ;;  %v373_v56 = vld [vmem:[#allocation8 + $0x48] sm:$0xff] }
  0x55   :  { %364 = vmatpush.msrb.mxu2 %v341_v57  ;;  %v98_v57 = vld [vmem:[#allocation8 + $0xb8] sm:$0xff] }
  0x57   :  { %365 = vmatpush.msrb.mxu2 %v340_v58  ;;  %v96_v58 = vld [vmem:[#allocation8 + $0x60] sm:$0xff] }
  0x59   :  { %366 = vmatpush.msrb.mxu2 %v339_v59  ;;  %v227_v59 = vld [vmem:[#allocation8 + $0x548] sm:$0xff] }
  0x5a   :  { %269 = vmatpush.msrb.mxu0 %v227_v59  ;;  %v431_v59 = vld [vmem:[#allocation8 + $0x240] sm:$0xff] }
  0x5b   :  { %367 = vmatpush.msrb.mxu2 %v338_v60  ;;  %v223_v60 = vld [vmem:[#allocation8 + $0x4f0] sm:$0xff] }
  0x5c   :  { %270 = vmatpush.msrb.mxu0 %v223_v60  ;;  %v438_v60 = vld [vmem:[#allocation8 + $0x2f8] sm:$0xff] }
  0x5d   :  { %368 = vmatpush.msrb.mxu2 %v337_v61  ;;  %v94_v61 = vld [vmem:[#allocation8 + $0x8] sm:$0xff] }
  0x5e   :  { %271 = vmatpush.msrb.mxu0 %v219_v62  ;;  %v435_v62 = vld [vmem:[#allocation8 + $0x2a0] sm:$0xff] }
  0x5f   :  { %501 = vmatpush.msra.mxu2 %v460_v8  ;;  %v421_v8 = vld [vmem:[#allocation8 + $0xf0] sm:$0xff] }
  0x60   :  { %272 = vmatpush.msrb.mxu0 %v215_v0  ;;  %v432_v0 = vld [vmem:[#allocation8 + $0x248] sm:$0xff] }
  0x61   :  { %502 = vmatpush.msra.mxu2 %v457_v10  ;;  %v417_v10 = vld [vmem:[#allocation8 + $0x90] sm:$0xff] }
  0x62   :  { %273 = vmatpush.msrb.mxu0 %v211_v2  ;;  %v426_v2 = vld [vmem:[#allocation8 + $0x198] sm:$0xff] }
  0x63   :  { %503 = vmatpush.msra.mxu2 %v454_v11  ;;  %v413_v11 = vld [vmem:[#allocation8 + $0x30] sm:$0xff] }
  0x64   :  { %274 = vmatpush.msrb.mxu0 %v207_v4  ;;  %v423_v4 = vld [vmem:[#allocation8 + $0x140] sm:$0xff] }
  0x65   :  { %504 = vmatpush.msra.mxu2 %v451_v14 }
  0x66   :  { %275 = vmatpush.msrb.mxu0 %v203_v6  ;;  %v419_v6 = vld [vmem:[#allocation8 + $0xe0] sm:$0xff] }
  0x67   :  { %505 = vmatpush.msra.mxu2 %v448_v17  ;;  %v410_v17 = vld [vmem:[#allocation11 + $0x1] sm:$0x1] }
  0x69   :  { %506 = vmatpush.msra.mxu2 %v445_v20 }
  0x6b   :  { %507 = vmatpush.msra.mxu2 %v442_v23  ;;  %v590_v23 = vld [vmem:[#allocation8 + $0x4c8] sm:$0xff] }
  0xbc   :  { %v142_v35 = vpop.f32.mrf.mxu0 }
  0xc1   :  { %v246_v36 = vpop.f32.mrf.mxu2 }
  0xc2   :  { %v309_v38 = vadd.f32 %v246_v36, %v142_v35 }
  0xc4   :  { %v311_v39 = vadd.f32 %v310_v37, %v309_v38  ;;  %v166_v37 = vld [vmem:[#allocation8 + $0x18] sm:$0xff]  ;;  %v100_v38 = vld [vmem:[#allocation8 + $0x110] sm:$0xff] }
  0xc5   :  { %264 = vmatpush.msra.mxu3 %v166_v37  ;;  %157 = vmatpush.msra.mxu1 %v100_v38  ;;  %v458_v37 = vld [vmem:[#allocation8 + $0x558] sm:$0xff] }
  0xc6   :  { %v313_v40 = vsel %vm312_vm0, %v311_v39, -inf  ;;  %265 = vmatmul.f32.vlgmr.msra.gmra.mxu3 %v883_v32 }
  0xc7   :  { %314 = vmax.xlane.f32.xlu0 %v313_v40  ;;  %v388_v40 = vld [vmem:[#allocation8 + $0x570] sm:$0xff]  ;;  %158 = vmatpush.msra.mxu1 %v98_v57  ;;  %v434_v57 = vld [vmem:[#allocation8 + $0x298] sm:$0xff] }
  0xc8   :  { %389 = vmatpush.msrb.mxu3 %v388_v40  ;;  %v172_v40 = vld [vmem:[#allocation8 + $0x80] sm:$0xff] }
  0xc9   :  { %159 = vmatpush.msra.mxu1 %v96_v58  ;;  %v441_v58 = vld [vmem:[#allocation8 + $0x350] sm:$0xff] }
  0xca   :  { %390 = vmatpush.msrb.mxu3 %v387_v42  ;;  %v455_v42 = vld [vmem:[#allocation8 + $0x500] sm:$0xff] }
  0xcb   :  { %160 = vmatpush.msra.mxu1 %v94_v61  ;;  %v428_v61 = vld [vmem:[#allocation8 + $0x1e8] sm:$0xff] }
  0xcc   :  { %391 = vmatpush.msrb.mxu3 %v386_v43  ;;  %161 = vmatmul.f32.vlgmr.msra.gmra.mxu1 %v885_v34  ;;  %v208_v34 = vld [vmem:[#allocation8 + $0x398] sm:$0xff]  ;;  %v427_v43 = vld [vmem:[#allocation8 + $0x1a0] sm:$0xff] }
  0xcd   :  { %289 = vmatpush.msrb.mxu1 %v228_v63  ;;  %v425_v63 = vld [vmem:[#allocation8 + $0x190] sm:$0xff] }
  0xce   :  { %392 = vmatpush.msrb.mxu3 %v385_v44  ;;  %v168_v44 = vld [vmem:[#allocation8 + $0x28] sm:$0xff] }
  0xcf   :  { %290 = vmatpush.msrb.mxu1 %v224_v1  ;;  %v429_v1 = vld [vmem:[#allocation8 + $0x1f0] sm:$0xff] }
  0xd0   :  { %393 = vmatpush.msrb.mxu3 %v384_v45  ;;  %v452_v45 = vld [vmem:[#allocation8 + $0x4a8] sm:$0xff] }
  0xd1   :  { %291 = vmatpush.msrb.mxu1 %v220_v3  ;;  %v422_v3 = vld [vmem:[#allocation8 + $0x138] sm:$0xff] }
  0xd2   :  { %394 = vmatpush.msrb.mxu3 %v383_v46  ;;  %v459_v46 = vld [vmem:[#allocation8 + $0x560] sm:$0xff] }
  0xd3   :  { %292 = vmatpush.msrb.mxu1 %v216_v5  ;;  %v424_v5 = vld [vmem:[#allocation8 + $0x148] sm:$0xff] }
  0xd5   :  { %293 = vmatpush.msrb.mxu1 %v212_v7  ;;  %v420_v7 = vld [vmem:[#allocation8 + $0xe8] sm:$0xff] }
  0xd7   :  { %294 = vmatpush.msrb.mxu1 %v208_v34  ;;  %v418_v34 = vld [vmem:[#allocation8 + $0x98] sm:$0xff] }
  0xd9   :  { %295 = vmatpush.msrb.mxu1 %v204_v13  ;;  %v415_v13 = vld [vmem:[#allocation8 + $0x40] sm:$0xff] }
  0xdb   :  { %296 = vmatpush.msrb.mxu1 %v200_v16 }
 0x13a   :  { %v315_v47 = vpop.xlane.xlu0 %314 }
 0x13b   :  { %v316_v48 = vsub.f32 %v311_v39, %v315_v47  ;;  %v382_v47 = vld [vmem:[#allocation8 + $0x360] sm:$0xff] }
 0x13c   :  { %395 = vmatpush.msrb.mxu3 %v382_v47  ;;  %v449_v47 = vld [vmem:[#allocation8 + $0x450] sm:$0xff] }
 0x13d   :  { %v317_v49 = vmul.f32 1.442695, %v316_v48  ;;  %v381_v48 = vld [vmem:[#allocation8 + $0x308] sm:$0xff] }
 0x13e   :  { %396 = vmatpush.msrb.mxu3 %v381_v48  ;;  %v456_v48 = vld [vmem:[#allocation8 + $0x508] sm:$0xff] }
 0x13f   :  { %669 = vpow2.f32 %v317_v49  ;;  %v380_v49 = vld [vmem:[#allocation8 + $0x2b0] sm:$0xff] }
 0x140   :  { %397 = vmatpush.msrb.mxu3 %v380_v49  ;;  %v446_v49 = vld [vmem:[#allocation8 + $0x3f8] sm:$0xff] }
 0x145   :  { %v890_v50 = vpop.eup %669 }
 0x146   :  { %v319_v51 = vsel %vm312_vm0, %v890_v50, 0.0 }
 0x147   :  { %320 = vadd.xlane.f32.xlu0 %v319_v51  ;;  %v378_v51 = vld [vmem:[#allocation8 + $0x200] sm:$0xff] }
 0x149   :  { %v266_v14 = vpop.f32.mrf.mxu3 }
 0x1ba   :  { %v321_v9 = vpop.xlane.xlu0 %320 }
 0x1bb   :  { %671 = vrcp.f32 %v321_v9  ;;  %v333_v25 = vand.u32 2147483648, %v321_v9  ;;  %v331_v27 = vand.u32 2147483647, %v321_v9  ;;  %vm327_vm2 = vweird.f32 %v321_v9 }
 0x1bd   :  { %v334_v35 = vor.u32 1.1754944e-38, %v333_v25  ;;  %vm332_vm4 = vcmp.eq.f32.partialorder %v331_v27, 8.507059e+37  ;;  %v188_v25 = vld [vmem:[#allocation8 + $0x1e0] sm:$0xff]  ;;  %v175_v27 = vld [vmem:[#allocation8 + $0xd0] sm:$0xff] }
 0x1c1   :  { %v672_v18 = vpop.eup %671 }
 0x1c2   :  { %v323_v19 = vmul.f32 %v672_v18, %v321_v9  ;;  %vm328_vm1 = vweird.f32 %v672_v18  ;;  %v199_v9 = vld [vmem:[#allocation8 + $0x2e0] sm:$0xff] }
 0x1c3   :  { %vm329_vm3 = vmor %vm327_vm2, %vm328_vm1  ;;  %276 = vmatpush.msrb.mxu0 %v199_v9  ;;  %v416_v9 = vld [vmem:[#allocation8 + $0x88] sm:$0xff] }
 0x1c4   :  { %v324_v22 = vsub.f32 1.0, %v323_v19  ;;  %v196_v19 = vld [vmem:[#allocation8 + $0x290] sm:$0xff] }
 0x1c5   :  { %277 = vmatpush.msrb.mxu0 %v195_v12  ;;  %297 = vmatpush.msrb.mxu1 %v196_v19  ;;  %v414_v12 = vld [vmem:[#allocation8 + $0x38] sm:$0xff] }
 0x1c6   :  { %v325_v26 = vmul.f32 %v672_v18, %v324_v22  ;;  %v192_v22 = vld [vmem:[#allocation8 + $0x238] sm:$0xff] }
 0x1c7   :  { %278 = vmatpush.msrb.mxu0 %v191_v15  ;;  %298 = vmatpush.msrb.mxu1 %v192_v22  ;;  %v162_v15 = vpop.f32.mrf.mxu1  ;;  %v591_v22 = vld [vmem:[#allocation8 + $0x520] sm:$0xff] }
 0x1c8   :  { %v326_v30 = vadd.f32 %v672_v18, %v325_v26  ;;  %v439_v26 = vld [vmem:[#allocation8 + $0x300] sm:$0xff] }
 0x1c9   :  { %299 = vmatpush.msrb.mxu1 %v188_v25  ;;  %508 = vmatpush.msra.mxu2 %v439_v26  ;;  %v589_v26 = vld [vmem:[#allocation8 + $0x470] sm:$0xff] }
 0x1ca   :  { %v330_v36 = vsel %vm329_vm3, %v672_v18, %v326_v30  ;;  %v187_v18 = vld [vmem:[#allocation8 + $0x1d8] sm:$0xff] }
 0x1cb   :  { %v335_v39 = vsel %vm332_vm4, %v334_v35, %v330_v36  ;;  %279 = vmatpush.msrb.mxu0 %v187_v18  ;;  %v171_v30 = vld [vmem:[#allocation8 + $0x78] sm:$0xff]  ;;  %300 = vmatpush.msrb.mxu1 %v184_v28  ;;  %v167_v35 = vld [vmem:[#allocation8 + $0x20] sm:$0xff] }
 0x1cc   :  { %v895_v41 = vmul.f32 %v890_v50, %v335_v39  ;;  %v379_v50 = vld [vmem:[#allocation8 + $0x258] sm:$0xff]  ;;  %509 = vmatpush.msra.mxu2 %v436_v29  ;;  %v587_v28 = vld [vmem:[#allocation8 + $0x3c0] sm:$0xff]  ;;  %v586_v29 = vld [vmem:[#allocation8 + $0x368] sm:$0xff] }
 0x1cd   :  { %398 = vmatpush.msrb.mxu3 %v379_v50  ;;  %280 = vmatpush.msrb.mxu0 %v183_v21  ;;  %v176_v36 = vld [vmem:[#allocation8 + $0xd8] sm:$0xff]  ;;  %v453_v50 = vld [vmem:[#allocation8 + $0x4b0] sm:$0xff] }
 0x1ce   :  { %369 = vmatmul.f32.vlgmr.msrb.gmra.mxu2 %v895_v41  ;;  %301 = vmatpush.msrb.mxu1 %v180_v31  ;;  %v430_v39 = vld [vmem:[#allocation8 + $0x1f8] sm:$0xff] }
 0x1cf   :  { %399 = vmatpush.msrb.mxu3 %v378_v51  ;;  %281 = vmatpush.msrb.mxu0 %v179_v24  ;;  %v443_v51 = vld [vmem:[#allocation8 + $0x3a0] sm:$0xff]  ;;  %v592_v21 = vld [vmem:[#allocation8 + $0x578] sm:$0xff] }
 0x1d0   :  { %510 = vmatpush.msra.mxu2 %v433_v33  ;;  %302 = vmatpush.msrb.mxu1 %v176_v36  ;;  %v522_v33 = vld [vmem:[#allocation11 + $0x2] sm:$0x1]  ;;  %v544_v36 = vld [vmem:[#allocation11 + $0x3] sm:$0x1] }
 0x1d1   :  { %400 = vmatpush.msrb.mxu3 %v377_v52  ;;  %282 = vmatpush.msrb.mxu0 %v175_v27  ;;  %v450_v52 = vld [vmem:[#allocation8 + $0x458] sm:$0xff] }
 0x1d2   :  { %511 = vmatpush.msra.mxu2 %v430_v39  ;;  %303 = vmatpush.msrb.mxu1 %v172_v40  ;;  %v588_v27 = vld [vmem:[#allocation8 + $0x418] sm:$0xff] }
 0x1d3   :  { %401 = vmatpush.msrb.mxu3 %v376_v53  ;;  %283 = vmatpush.msrb.mxu0 %v171_v30  ;;  %v440_v53 = vld [vmem:[#allocation8 + $0x348] sm:$0xff]  ;;  %v585_v30 = vld [vmem:[#allocation8 + $0x310] sm:$0xff]  ;;  %v584_v39 = vld [vmem:[#allocation8 + $0x2b8] sm:$0xff] }
 0x1d4   :  { %512 = vmatpush.msra.mxu2 %v427_v43  ;;  %304 = vmatpush.msrb.mxu1 %v168_v44  ;;  %v583_v43 = vld [vmem:[#allocation8 + $0x260] sm:$0xff] }
 0x1d5   :  { %402 = vmatpush.msrb.mxu3 %v375_v54  ;;  %284 = vmatpush.msrb.mxu0 %v167_v35  ;;  %v447_v54 = vld [vmem:[#allocation8 + $0x400] sm:$0xff] }
 0x1d6   :  { %285 = vmatmul.f32.vlgmr.msrb.gmra.mxu0 %v883_v32  ;;  %481 = vmatpush.msra.mxu1 %v459_v46  ;;  %v582_v46 = vld [vmem:[#allocation8 + $0x208] sm:$0xff] }
 0x1d7   :  { %403 = vmatpush.msrb.mxu3 %v374_v55  ;;  %461 = vmatpush.msra.mxu0 %v458_v37  ;;  %v437_v55 = vld [vmem:[#allocation8 + $0x2f0] sm:$0xff] }
 0x1d8   :  { %305 = vmatmul.f32.vlgmr.msrb.gmra.mxu1 %v883_v32  ;;  %513 = vmatpush.msra.mxu2 %v424_v5 }
 0x1d9   :  { %404 = vmatpush.msrb.mxu3 %v373_v56  ;;  %462 = vmatpush.msra.mxu0 %v455_v42  ;;  %v444_v56 = vld [vmem:[#allocation8 + $0x3a8] sm:$0xff] }
 0x1da   :  { %482 = vmatpush.msra.mxu1 %v456_v48  ;;  %514 = vmatpush.msra.mxu2 %v421_v8  ;;  %v580_v48 = vld [vmem:[#allocation8 + $0x158] sm:$0xff] }
 0x1db   :  { %463 = vmatpush.msra.mxu0 %v452_v45  ;;  %594 = vmatpush.msra.mxu3 %v592_v21 }
 0x1dc   :  { %483 = vmatpush.msra.mxu1 %v453_v50  ;;  %515 = vmatpush.msra.mxu2 %v418_v34  ;;  %v578_v50 = vld [vmem:[#allocation8 + $0xa8] sm:$0xff] }
 0x1dd   :  { %464 = vmatpush.msra.mxu0 %v449_v47  ;;  %595 = vmatpush.msra.mxu3 %v591_v22  ;;  %v581_v47 = vld [vmem:[#allocation8 + $0x1b0] sm:$0xff] }
 0x1de   :  { %484 = vmatpush.msra.mxu1 %v450_v52  ;;  %516 = vmatpush.msra.mxu2 %v415_v13  ;;  %v577_v52 = vld [vmem:[#allocation8 + $0x50] sm:$0xff] }
 0x1df   :  { %465 = vmatpush.msra.mxu0 %v446_v49  ;;  %596 = vmatpush.msra.mxu3 %v590_v23  ;;  %v579_v49 = vld [vmem:[#allocation8 + $0x100] sm:$0xff] }
 0x1e0   :  { %485 = vmatpush.msra.mxu1 %v447_v54  ;;  %v593_v23 = vld [vmem:[#allocation11 + $0x6] sm:$0x1] }
 0x1e1   :  { %466 = vmatpush.msra.mxu0 %v443_v51  ;;  %597 = vmatpush.msra.mxu3 %v589_v26 }
 0x1e2   :  { %486 = vmatpush.msra.mxu1 %v444_v56 }
 0x1e3   :  { %467 = vmatpush.msra.mxu0 %v440_v53  ;;  %598 = vmatpush.msra.mxu3 %v588_v27 }
 0x1e4   :  { %487 = vmatpush.msra.mxu1 %v441_v58 }
 0x1e5   :  { %468 = vmatpush.msra.mxu0 %v437_v55  ;;  %599 = vmatpush.msra.mxu3 %v587_v28 }
 0x1e6   :  { %488 = vmatpush.msra.mxu1 %v438_v60 }
 0x1e7   :  { %469 = vmatpush.msra.mxu0 %v434_v57  ;;  %600 = vmatpush.msra.mxu3 %v586_v29 }
 0x1e8   :  { %489 = vmatpush.msra.mxu1 %v435_v62 }
 0x1e9   :  { %470 = vmatpush.msra.mxu0 %v431_v59  ;;  %601 = vmatpush.msra.mxu3 %v585_v30 }
 0x1ea   :  { %490 = vmatpush.msra.mxu1 %v432_v0 }
 0x1eb   :  { %471 = vmatpush.msra.mxu0 %v428_v61  ;;  %602 = vmatpush.msra.mxu3 %v584_v39 }
 0x1ec   :  { %491 = vmatpush.msra.mxu1 %v429_v1  ;;  %v567_v1 = vld [vmem:[#allocation11 + $0x5] sm:$0x1] }
 0x1ed   :  { %472 = vmatpush.msra.mxu0 %v425_v63  ;;  %603 = vmatpush.msra.mxu3 %v583_v43 }
 0x1ee   :  { %492 = vmatpush.msra.mxu1 %v426_v2 }
 0x1ef   :  { %473 = vmatpush.msra.mxu0 %v422_v3  ;;  %604 = vmatpush.msra.mxu3 %v582_v46 }
 0x1f0   :  { %493 = vmatpush.msra.mxu1 %v423_v4 }
 0x1f1   :  { %474 = vmatpush.msra.mxu0 %v419_v6  ;;  %605 = vmatpush.msra.mxu3 %v581_v47  ;;  %v565_v6 = vld [vmem:[#allocation11 + $0x4] sm:$0x1] }
 0x1f2   :  { %494 = vmatpush.msra.mxu1 %v420_v7 }
 0x1f3   :  { %475 = vmatpush.msra.mxu0 %v416_v9  ;;  %606 = vmatpush.msra.mxu3 %v580_v48 }
 0x1f4   :  { %495 = vmatpush.msra.mxu1 %v417_v10 }
 0x1f5   :  { %476 = vmatpush.msra.mxu0 %v413_v11  ;;  %607 = vmatpush.msra.mxu3 %v579_v49 }
 0x1f6   :  { %496 = vmatpush.msra.mxu1 %v414_v12 }
 0x1f7   :  { %608 = vmatpush.msra.mxu3 %v578_v50 }
 0x1f9   :  { %609 = vmatpush.msra.mxu3 %v577_v52 }
 0x251   :  { %v370_v38 = vpop.f32.mrf.mxu2 }
 0x252   :  { %405 = vmatmul.f32.vlgmr.msrb.gmra.mxu3 %v370_v38 }
 0x253   :  { %v286_v24 = vpop.f32.mrf.mxu0 }
 0x255   :  { %v902_v25 = vpop.f32.mrf.mxu1 }
 0x256   :  { %v568_v7 = vadd.f32 %v567_v1, %v902_v25 }
 0x2d5   :  { %v406_v16 = vpop.f32.mrf.mxu3 }
 0x2d6   :  { %v409_v18 = vadd.f32 %v406_v16, %v162_v15 }
 0x2d8   :  { %v411_v19 = vadd.f32 %v410_v17, %v409_v18 }
 0x2da   :  { %v412_v20 = vmax.f32 %v411_v19, 0.0 }
 0x2dc   :  { %477 = vmatmul.f32.vlgmr.msra.gmra.mxu0 %v412_v20  ;;  %497 = vmatmul.f32.vlgmr.msra.gmra.mxu1 %v412_v20 }
 0x2dd   :  { %517 = vmatmul.f32.vlgmr.msra.gmra.mxu2 %v412_v20 }
 0x359   :  { %v478_v31 = vpop.f32.mrf.mxu0  ;;  %v498_v35 = vpop.f32.mrf.mxu1 }
 0x35a   :  { %v521_v37 = vadd.f32 %v478_v31, %v266_v14  ;;  %v543_v38 = vadd.f32 %v498_v35, %v286_v24 }
 0x35c   :  { %v523_v40 = vadd.f32 %v522_v33, %v521_v37  ;;  %v545_v42 = vadd.f32 %v544_v36, %v543_v38  ;;  %v630_v38 = vrot.slane %v895_v41, 6 }
 0x35e   :  { %v658_v44 = vmul.f32 -1.442695, %v523_v40  ;;  %v659_v45 = vmul.f32 -1.442695, %v545_v42 }
 0x360   :  { %673 = vpow2.f32 %v658_v44  ;;  %v518_v4 = vpop.f32.mrf.mxu2 }
 0x361   :  { %675 = vpow2.f32 %v659_v45  ;;  %v566_v34 = vadd.f32 %v565_v6, %v518_v4 }
 0x366   :  { %v674_v51 = vpop.eup %673 }
 0x367   :  { %v676_v53 = vpop.eup %675  ;;  %v527_v54 = vadd.f32 1.0, %v674_v51 }
 0x368   :  { %v549_v55 = vadd.f32 1.0, %v676_v53 }
 0x369   :  { %677 = vrcp.f32 %v527_v54  ;;  %v539_v62 = vand.u32 2147483648, %v527_v54  ;;  %v537_v0 = vand.u32 2147483647, %v527_v54  ;;  %vm533_vm6 = vweird.f32 %v527_v54 }
 0x36a   :  { %679 = vrcp.f32 %v549_v55  ;;  %v561_v12 = vand.u32 2147483648, %v549_v55  ;;  %vm555_vm10 = vweird.f32 %v549_v55  ;;  %v559_v13 = vand.u32 2147483647, %v549_v55 }
 0x36b   :  { %v540_v5 = vor.u32 1.1754944e-38, %v539_v62  ;;  %vm538_vm8 = vcmp.eq.f32.partialorder %v537_v0, 8.507059e+37 }
 0x36c   :  { %v562_v16 = vor.u32 1.1754944e-38, %v561_v12  ;;  %vm560_vm12 = vcmp.eq.f32.partialorder %v559_v13, 8.507059e+37 }
 0x36f   :  { %v678_v56 = vpop.eup %677 }
 0x370   :  { %v680_v57 = vpop.eup %679  ;;  %v529_v58 = vmul.f32 %v678_v56, %v527_v54  ;;  %vm534_vm5 = vweird.f32 %v678_v56 }
 0x371   :  { %v551_v59 = vmul.f32 %v680_v57, %v549_v55  ;;  %vm535_vm7 = vmor %vm533_vm6, %vm534_vm5  ;;  %vm556_vm9 = vweird.f32 %v680_v57 }
 0x372   :  { %v530_v60 = vsub.f32 1.0, %v529_v58  ;;  %vm557_vm11 = vmor %vm555_vm10, %vm556_vm9 }
 0x373   :  { %v552_v61 = vsub.f32 1.0, %v551_v59 }
 0x374   :  { %v531_v63 = vmul.f32 %v678_v56, %v530_v60 }
 0x375   :  { %v553_v2 = vmul.f32 %v680_v57, %v552_v61 }
 0x376   :  { %v532_v3 = vadd.f32 %v678_v56, %v531_v63 }
 0x377   :  { %v554_v10 = vadd.f32 %v680_v57, %v553_v2 }
 0x378   :  { %v536_v8 = vsel %vm535_vm7, %v678_v56, %v532_v3 }
 0x379   :  { %v541_v9 = vsel %vm538_vm8, %v540_v5, %v536_v8  ;;  %v558_v15 = vsel %vm557_vm11, %v680_v57, %v554_v10 }
 0x37a   :  { %v569_v11 = vmul.f32 %v568_v7, %v541_v9  ;;  %v563_v17 = vsel %vm560_vm12, %v562_v16, %v558_v15 }
 0x37b   :  { %v572_v18 = vsub.f32 1.0, %v563_v17  ;;  %v574_v21 = vmul.f32 %v563_v17, %v883_v32 }
 0x37c   :  { %v570_v14 = vadd.f32 %v569_v11, %v566_v34 }
 0x37e   :  { %681 = vtanh.f32 %v570_v14 }
 0x384   :  { %v682_v19 = vpop.eup %681 }
 0x385   :  { %v573_v20 = vmul.f32 %v682_v19, %v572_v18 }
 0x387   :  { %v575_v22 = vadd.f32 %v574_v21, %v573_v20 }
 0x389   :  { %576 = vst [vmem:[#allocation2] sm:$0x1] %v575_v22  ;;  %610 = vmatmul.f32.vlgmr.msra.gmra.mxu3 %v575_v22  ;;  %v627_v36 = vrot.slane %v575_v22, 7 }
 0x40c   :  { %v611_v24 = vpop.f32.mrf.mxu3 }
 0x40d   :  { %v612_v25 = vadd.f32 %v611_v24, %v593_v23 }
 0x40f   :  { %v614_v26 = vsel %vm312_vm0, %v612_v25, -inf }
 0x410   :  { %615 = vmax.xlane.f32.xlu1 %v614_v26 }
 0x483   :  { %v616_v27 = vpop.xlane.xlu1 %615 }
 0x484   :  { %v617_v28 = vsub.f32 %v612_v25, %v616_v27 }
 0x486   :  { %v618_v29 = vmul.f32 1.442695, %v617_v28 }
 0x488   :  { %683 = vpow2.f32 %v618_v29 }
 0x48e   :  { %v684_v30 = vpop.eup %683 }
 0x48f   :  { %v620_v31 = vsel %vm312_vm0, %v684_v30, 0.0 }
 0x490   :  { %621 = vadd.xlane.f32.xlu1 %v620_v31 }
 0x503   :  { %v622_v33 = vpop.xlane.xlu1 %621 }
 0x504   :  { %685 = vlog2.f32 %v622_v33 }
 0x50a   :  { %v686_v32 = vpop.eup %685 }
 0x50b   :  { %v624_v35 = vmul.f32 0.6931472, %v686_v32 }
 0x50d   :  { %v625_v37 = vsub.f32 %v617_v28, %v624_v35 }
 0x50f   :  { %v632_v39 = vsel %vm312_vm0, %v625_v37, %v627_v36 }
 0x510   :  { %v634_v40 = vsel %vm633_vm13, %v632_v39, %v630_v38 }
 0x511   :  { %v636_v42 = vsel %vm635_vm14, %v634_v40, 0.0 }
 0x512   :  { %637 = vst [vmem:[#allocation13] sm:$0xff] %v636_v42 }
 0x513   :  { %648 = dma.vmem_to_hbm [thread:$0]  %s644_s28, 128, %s646_s7, [#allocation7]  }
 0x514   :  { %813 = dma.done.wait [#allocation7], 128  }
 0x515   :  { %814 = vsyncadd [#allocation7], 4294967168 }
 0x516   :  { %653 = vsyncpa [#allocation6], 1 }
 0x517   :  { %654 = vsyncpa [#allocation9], 1 }
 0x518   :  { %655 = vsyncpa [#allocation12], 1 }
 0x519   :  { %656 = vsyncpa [#allocation7], 1 }

</bundles_post_ra>
